<compile_context>
chip_gen: v6e
topology: v6e:2x2x1
jax: 0.10.0
libtpu: 0.0.40
codegen_flags: <defaults>
</compile_context>

<pallas_src>
import math

import jax
import jax.numpy as jnp
from jax.experimental import pallas as pl
from jax.experimental.pallas import tpu as pltpu


def _round_up(v, m):
    return ((v + m - 1) // m) * m


def gcn_kernel(x_ref, adj_ref, w_ref, b_ref, o_ref):
    k = pl.program_id(1)

    @pl.when(k == 0)
    def _init():
        o_ref[...] = jnp.zeros_like(o_ref)

    # h_blk = x[k_tile] @ W + b   (nn.Linear semantics; W passed as (F_in, F_out_p)).
    # Adding b per K-tile is exact: sum_k adj[i,k] @ (x[k] W + b) = adj @ (X W + b).
    h = jnp.dot(x_ref[...], w_ref[...], preferred_element_type=jnp.float32)
    h = h + b_ref[...]                      # f32 epilogue (v5e-safe)

    # out[i] += adj[i_tile, k_tile] @ h_blk  (bf16 x bf16 MXU, f32 accumulation
    # directly in the VMEM-resident output block).
    o_ref[...] += jnp.dot(adj_ref[...], h.astype(adj_ref.dtype),
                          preferred_element_type=jnp.float32)

    @pl.when(k == pl.num_programs(1) - 1)
    def _finalize():
        o_ref[...] = jnp.maximum(o_ref[...], 0.0)


def gcn_layer(x, adj, weight, bias, *, tm=256, tk=256):
    """x: (N, F_in), adj: (N, N), weight: (F_out, F_in), bias: (F_out,)."""
    n, f_in = x.shape
    f_out = weight.shape[0]

    # Lane-pad the output feature dim to a multiple of 128.
    f_out_p = _round_up(f_out, 128)

    # Pick tiles; pad the node axis so tm_/tk_ divide it evenly.
    if n <= max(tm, tk):
        n_p = _round_up(n, 8)
        tm_ = tk_ = n_p                     # single tile along the node axis
    else:
        tm_, tk_ = tm, tk
        n_p = _round_up(n, math.lcm(tm_, tk_))

    # Wrapper-side layout plumbing (bf16 MXU operands, zero padding).
    x_p = jnp.pad(x, ((0, n_p - n), (0, 0))).astype(jnp.bfloat16)
    adj_p = jnp.pad(adj, ((0, n_p - n), (0, n_p - n))).astype(jnp.bfloat16)
    w_p = jnp.pad(weight.T, ((0, 0), (0, f_out_p - f_out))).astype(jnp.bfloat16)
    b_p = jnp.pad(bias, (0, f_out_p - f_out)).reshape(1, f_out_p).astype(jnp.float32)

    grid_i, grid_k = n_p // tm_, n_p // tk_
    grid = (grid_i, grid_k)

    # VMEM budget: double-buffered bf16 tiles + resident W/bias + f32 output
    # block (accumulator) + h intermediate headroom.
    vmem_est = (
        2 * tm_ * tk_ * 2          # adj tiles
        + 2 * tk_ * f_in * 2       # x tiles
        + 2 * f_in * f_out_p * 2   # weight (resident)
        + 2 * f_out_p * 4          # bias (resident)
        + 2 * tm_ * f_out_p * 4    # f32 output tiles (accumulator)
        + tk_ * f_out_p * 4        # h intermediate
    )
    vmem_limit = int(min(max(2 * vmem_est, 16 * 1024 * 1024), 64 * 1024 * 1024))

    # Advisory cost hint for the XLA scheduler.
    flops = grid_i * grid_k * (2 * tk_ * f_in * f_out_p + 2 * tm_ * tk_ * f_out_p)
    bytes_accessed = (
        grid_i * n_p * f_in * 2        # x (re-read per row tile)
        + n_p * n_p * 2                # adj
        + f_in * f_out_p * 2           # W
        + f_out_p * 4                  # bias
        + n_p * f_out_p * 4            # output
    )

    out = pl.pallas_call(
        gcn_kernel,
        out_shape=jax.ShapeDtypeStruct((n_p, f_out_p), jnp.float32),
        grid=grid,
        in_specs=[
            pl.BlockSpec((tk_, f_in), lambda i, k: (k, 0)),       # x
            pl.BlockSpec((tm_, tk_), lambda i, k: (i, k)),        # adj
            pl.BlockSpec((f_in, f_out_p), lambda i, k: (0, 0)),   # W (resident)
            pl.BlockSpec((1, f_out_p), lambda i, k: (0, 0)),      # bias (resident)
        ],
        out_specs=pl.BlockSpec((tm_, f_out_p), lambda i, k: (i, 0)),
        compiler_params=pltpu.CompilerParams(
            dimension_semantics=("parallel", "arbitrary"),
            vmem_limit_bytes=vmem_limit,
        ),
        cost_estimate=pl.CostEstimate(flops=flops, transcendentals=0,
                                      bytes_accessed=bytes_accessed),
    )(x_p, adj_p, w_p, b_p)

    return out[:n, :f_out].astype(x.dtype)


if __name__ == "__main__":
    def make_inputs(key, n, f_in, f_out):
        kx, ka, kw, kb = jax.random.split(key, 4)
        x = jax.random.normal(kx, (n, f_in), dtype=jnp.float32)
        a = jax.random.uniform(ka, (n, n), dtype=jnp.float32)
        adj = (a + a.T) * 0.5
        bound = 1.0 / (f_in ** 0.5)
        weight = jax.random.uniform(kw, (f_out, f_in), jnp.float32, -bound, bound)
        bias = jax.random.uniform(kb, (f_out,), jnp.float32, -bound, bound)
        return x, adj, weight, bias

    # Small, module-consistent shapes (single-tile path): 16 nodes, 32 -> 64 feats.
    N, F_IN, F_OUT = 16, 32, 64
    x, adj, weight, bias = make_inputs(jax.random.PRNGKey(0), N, F_IN, F_OUT)
    out = jax.block_until_ready(gcn_layer(x, adj, weight, bias))
    ref = jnp.maximum(adj @ (x @ weight.T + bias), 0.0)
    assert out.shape == (N, F_OUT)
    assert jnp.allclose(out, ref, atol=0.15, rtol=0.05), \
        float(jnp.max(jnp.abs(out - ref)))

    # Slightly larger case with forced small tiles to exercise the tiled
    # (row, K) accumulation path (grid = (4, 2) after padding 200 -> 256).
    x2, adj2, w2, b2 = make_inputs(jax.random.PRNGKey(1), 200, F_IN, F_OUT)
    out2 = jax.block_until_ready(gcn_layer(x2, adj2, w2, b2, tm=64, tk=128))
    ref2 = jnp.maximum(adj2 @ (x2 @ w2.T + b2), 0.0)
    assert out2.shape == (200, F_OUT)
    assert jnp.allclose(out2, ref2, atol=0.3, rtol=0.05), \
        float(jnp.max(jnp.abs(out2 - ref2)))

    print("KERNEL_OK")
</pallas_src>

<mosaic_0001>
module attributes {stable_mosaic.version = 11 : i64} {
  func.func @gcn_kernel(%arg0: i32, %arg1: i32, %arg2: memref<16x32xbf16, #tpu.memory_space<vmem>>, %arg3: memref<16x16xbf16, #tpu.memory_space<vmem>>, %arg4: memref<32x128xbf16, #tpu.memory_space<vmem>>, %arg5: memref<1x128xf32, #tpu.memory_space<vmem>>, %arg6: memref<16x128xf32, #tpu.memory_space<vmem>>) attributes {dimension_semantics = [#tpu.dimension_semantics<parallel>, #tpu.dimension_semantics<arbitrary>], iteration_bounds = array<i64: 1, 1>, scalar_prefetch = 0 : i64, scratch_operands = 0 : i64, tpu.core_type = #tpu.core_type<tc>, window_params = [{transform_indices = @transform_0, window_bounds = array<i64: 16, 32>}, {transform_indices = @transform_1, window_bounds = array<i64: 16, 16>}, {pipeline_mode = #tpu.pipeline_mode<synchronous>, transform_indices = @transform_2, window_bounds = array<i64: 32, 128>}, {pipeline_mode = #tpu.pipeline_mode<synchronous>, transform_indices = @transform_3, window_bounds = array<i64: 1, 128>}, {transform_indices = @transform_4, window_bounds = array<i64: 16, 128>}]} {
    %c0_i32 = arith.constant 0 : i32
    %0 = arith.cmpi eq, %arg1, %c0_i32 : i32
    %1 = arith.extui %0 : i1 to i32
    %c0_i32_0 = arith.constant 0 : i32
    %2 = arith.cmpi ne, %1, %c0_i32_0 : i32
    scf.if %2 {
      %cst_15 = arith.constant 0.000000e+00 : f32
      %18 = vector.broadcast %cst_15 : f32 to vector<16x128xf32>
      %c0_16 = arith.constant 0 : index
      %c0_17 = arith.constant 0 : index
      %19 = vector.load %arg6[%c0_16, %c0_17] : memref<16x128xf32, #tpu.memory_space<vmem>>, vector<16x128xf32>
      tpu.vector_store %arg6[%c0_16, %c0_17], %18 {strides = array<i32>} : memref<16x128xf32, #tpu.memory_space<vmem>>, vector<16x128xf32>,
    } else {
    }
    %c0 = arith.constant 0 : index
    %c0_1 = arith.constant 0 : index
    %3 = vector.load %arg2[%c0, %c0_1] : memref<16x32xbf16, #tpu.memory_space<vmem>>, vector<16x32xbf16>
    %c0_2 = arith.constant 0 : index
    %c0_3 = arith.constant 0 : index
    %4 = vector.load %arg4[%c0_2, %c0_3] : memref<32x128xbf16, #tpu.memory_space<vmem>>, vector<32x128xbf16>
    %cst = arith.constant dense<0.000000e+00> : vector<16x128xf32>
    %5 = tpu.matmul %3, %4, %cst {dimension_numbers = #tpu.dot_dimension_numbers<[1], [0], [0], [1], [0, 0, 1, 1], [], []>} : vector<16x32xbf16>, vector<32x128xbf16>, vector<16x128xf32> -> vector<16x128xf32>
    %c0_4 = arith.constant 0 : index
    %c0_5 = arith.constant 0 : index
    %6 = vector.load %arg5[%c0_4, %c0_5] : memref<1x128xf32, #tpu.memory_space<vmem>>, vector<1x128xf32>
    %7 = vector.broadcast %6 : vector<1x128xf32> to vector<16x128xf32>
    %8 = arith.addf %5, %7 : vector<16x128xf32>
    %c0_6 = arith.constant 0 : index
    %c0_7 = arith.constant 0 : index
    %9 = vector.load %arg6[%c0_6, %c0_7] : memref<16x128xf32, #tpu.memory_space<vmem>>, vector<16x128xf32>
    %c0_8 = arith.constant 0 : index
    %c0_9 = arith.constant 0 : index
    %10 = vector.load %arg3[%c0_8, %c0_9] : memref<16x16xbf16, #tpu.memory_space<vmem>>, vector<16x16xbf16>
    %11 = arith.truncf %8 : vector<16x128xf32> to vector<16x128xbf16>
    %cst_10 = arith.constant dense<0.000000e+00> : vector<16x128xf32>
    %12 = tpu.matmul %10, %11, %cst_10 {dimension_numbers = #tpu.dot_dimension_numbers<[1], [0], [0], [1], [0, 0, 1, 1], [], []>} : vector<16x16xbf16>, vector<16x128xbf16>, vector<16x128xf32> -> vector<16x128xf32>
    %13 = arith.addf %9, %12 : vector<16x128xf32>
    %c0_11 = arith.constant 0 : index
    %c0_12 = arith.constant 0 : index
    %14 = vector.load %arg6[%c0_11, %c0_12] : memref<16x128xf32, #tpu.memory_space<vmem>>, vector<16x128xf32>
    tpu.vector_store %arg6[%c0_11, %c0_12], %13 {strides = array<i32>} : memref<16x128xf32, #tpu.memory_space<vmem>>, vector<16x128xf32>,
    %c0_i32_13 = arith.constant 0 : i32
    %15 = arith.cmpi eq, %arg1, %c0_i32_13 : i32
    %16 = arith.extui %15 : i1 to i32
    %c0_i32_14 = arith.constant 0 : i32
    %17 = arith.cmpi ne, %16, %c0_i32_14 : i32
    scf.if %17 {
      %c0_15 = arith.constant 0 : index
      %c0_16 = arith.constant 0 : index
      %18 = vector.load %arg6[%c0_15, %c0_16] : memref<16x128xf32, #tpu.memory_space<vmem>>, vector<16x128xf32>
      %cst_17 = arith.constant 0.000000e+00 : f32
      %19 = vector.broadcast %cst_17 : f32 to vector<16x128xf32>
      %20 = arith.maximumf %18, %19 : vector<16x128xf32>
      %c0_18 = arith.constant 0 : index
      %c0_19 = arith.constant 0 : index
      %21 = vector.load %arg6[%c0_18, %c0_19] : memref<16x128xf32, #tpu.memory_space<vmem>>, vector<16x128xf32>
      tpu.vector_store %arg6[%c0_18, %c0_19], %20 {strides = array<i32>} : memref<16x128xf32, #tpu.memory_space<vmem>>, vector<16x128xf32>,
    } else {
    }
    return
  }
  func.func @transform_0(%arg0: i32, %arg1: i32) -> (i32, i32) {
    %c0_i32 = arith.constant 0 : i32
    %c0_i32_0 = arith.constant 0 : i32
    return %arg1, %c0_i32 : i32, i32
  }
  func.func @transform_1(%arg0: i32, %arg1: i32) -> (i32, i32) {
    %c0_i32 = arith.constant 0 : i32
    return %arg0, %arg1 : i32, i32
  }
  func.func @transform_2(%arg0: i32, %arg1: i32) -> (i32, i32) {
    %c0_i32 = arith.constant 0 : i32
    %c0_i32_0 = arith.constant 0 : i32
    %c0_i32_1 = arith.constant 0 : i32
    return %c0_i32, %c0_i32_0 : i32, i32
  }
  func.func @transform_3(%arg0: i32, %arg1: i32) -> (i32, i32) {
    %c0_i32 = arith.constant 0 : i32
    %c0_i32_0 = arith.constant 0 : i32
    %c0_i32_1 = arith.constant 0 : i32
    return %c0_i32, %c0_i32_0 : i32, i32
  }
  func.func @transform_4(%arg0: i32, %arg1: i32) -> (i32, i32) {
    %c0_i32 = arith.constant 0 : i32
    %c0_i32_0 = arith.constant 0 : i32
    return %arg0, %c0_i32 : i32, i32
  }
}

</mosaic_0001>

<bundles_post_ra>
// kernel: tpu_custom_call.1
= control target key start
LH: loop header
LB: loop body
LE: loop exit
PB: predicated region body
PF: predicated region fallthrough
CT: control target
= control target key end

     0   :  { %9 = vsyncpa [#allocation3], 0  ;;  %s403_s0 = inlined_call_operand.hbm [shape: bf16[16,32], index: 0, kind: input, shape index: {}]   ;;  %s404_s1 = inlined_call_operand.hbm [shape: bf16[16,16], index: 1, kind: input, shape index: {}]   ;;  %s405_s2 = inlined_call_operand.hbm [shape: bf16[32,128], index: 2, kind: input, shape index: {}]   ;;  %s406_s3 = inlined_call_operand.vmem [shape: f32[1,128], index: 3, kind: input, shape index: {}]   ;;  %s407_s4 = inlined_call_operand.hbm [shape: f32[16,128], index: 4, kind: output, shape index: {}]  }
   0x1   :  { %10 = vsyncpa [#allocation6], 0 }
   0x2   :  { %11 = vsyncpa [#allocation4], 0  ;;  %s353_s15 = smov [#allocation5]   ;;  %s354_s17 = smov [#allocation2]  }
   0x3   :  { %s29_s16 = sshll.u32 %s353_s15, 4  ;;  %s17_s18 = sshll.u32 %s354_s17, 4  ;;  %s30_s16 = int_to_ptr.vmem [resolvable:$true] %s29_s16  ;;  %s18_s18 = int_to_ptr.vmem [resolvable:$true] %s17_s18 }
   0x4   :  { %s275_s19 = scalar_lea.vmem %s30_s16, 128  ;;  %p280_p1 = scmp.lt.s32.totalorder %s30_s16, %s30_s16 }
   0x5   :  { %p276_p0 = scmp.ne.s32.totalorder %s30_s16, %s275_s19  ;;  %p281_p2 = scmp.lt.s32.totalorder %s275_s19, %s275_s19 }
   0x7   :  { %p282_p3 = por %p281_p2, %p280_p1 }
   0x9   :  { %p283_p4 = pnand %p282_p3, %p276_p0 }
   0xb   :  { %286 = shalt.err (!%p283_p4)
}
   0xc   :  { %s355_s20 = smov 64   ;;  %s356_s21 = smov 4  }
   0xd   :  { %35 = dma.hbm_to_vmem [thread:$0]  %s404_s1, 128, %s30_s16, [#allocation6], %s355_s20, %s355_s20, %s356_s21  }
   0xe   :  { %s295_s24 = scalar_lea.vmem %s18_s18, 128  ;;  %p300_p6 = scmp.lt.s32.totalorder %s18_s18, %s18_s18 }
   0xf   :  { %p296_p5 = scmp.ne.s32.totalorder %s18_s18, %s295_s24  ;;  %p301_p7 = scmp.lt.s32.totalorder %s295_s24, %s295_s24 }
  0x11   :  { %p302_p8 = por %p301_p7, %p300_p6 }
  0x13   :  { %p303_p9 = pnand %p302_p8, %p296_p5 }
  0x15   :  { %306 = shalt.err (!%p303_p9)
}
  0x16   :  { %23 = dma.hbm_to_vmem [thread:$0]  %s403_s0, 128, %s18_s18, [#allocation3], %s355_s20, %s355_s20, %s356_s21  }
  0x17   :  { %s357_s27 = smov [#allocation7]  }
  0x18   :  { %s41_s28 = sshll.u32 %s357_s27, 4  ;;  %s42_s28 = int_to_ptr.vmem [resolvable:$true] %s41_s28 }
  0x19   :  { %s315_s29 = scalar_lea.vmem %s42_s28, 256  ;;  %p320_p11 = scmp.lt.s32.totalorder %s42_s28, %s42_s28 }
  0x1a   :  { %p316_p10 = scmp.ne.s32.totalorder %s42_s28, %s315_s29  ;;  %p321_p12 = scmp.lt.s32.totalorder %s315_s29, %s315_s29 }
  0x1c   :  { %p322_p13 = por %p321_p12, %p320_p11 }
  0x1e   :  { %p323_p0 = pnand %p322_p13, %p316_p10 }
  0x20   :  { %326 = shalt.err (!%p323_p0)
}
  0x21   :  { %47 = dma.hbm_to_vmem [thread:$0]  %s405_s2, 256, %s42_s28, [#allocation6], %s355_s20, %s355_s20, %s356_s21  }
  0x22   :  { %347 = dma.done.wait [#allocation3], 128  }
  0x23   :  { %348 = vsyncadd [#allocation3], 4294967168 }
  0x24   :  { %349 = dma.done.wait [#allocation6], 384  }
  0x25   :  { %350 = vsyncadd [#allocation6], 4294966912  ;;  %v358_v0 = vmov 0.0   ;;  %vm359_vm0 = vmmov 0   ;;  %v263_v1 = vld [vmem:[#allocation7 + $0x8] sm:$0xff]   ;;  %v264_v2 = vld [vmem:[#allocation7] sm:$0xff]  }
  0x26   :  { %239 = vmatprep.subr.bf16.mxu0 %v358_v0  ;;  %243 = vmatprep.mubr.msk.bf16.mxu0 %vm359_vm0, %v358_v0  ;;  %v265_v3 = vld [vmem:[#allocation2] sm:$0xff]   ;;  %vm96_vm1 = vcmask 261120   ;;  %v266_v12 = vld [vmem:[#allocation5] sm:$0xff]   ;;  %vm151_vm2 = vcmask 130048   ;;  %s360_s5 = smov [#allocation8]  }
  0x27   :  { %247 = vmatprep.subr.bf16.mxu1 %v358_v0  ;;  %249 = vmatprep.mubr.msk.bf16.mxu1 %vm359_vm0, %v358_v0  ;;  %v227_v5 = vld [vmem:[%s406_s3] ss:$0 sm:$0xff]  ;;  %s214_s6 = sshll.u32 %s360_s5, 4  ;;  %s215_s6 = int_to_ptr.vmem [resolvable:$true] %s214_s6 }
  0x28   :  { %240 = vmatpush3.bf16.msra.mxu0 %v263_v1  ;;  %s327_s3 = scalar_lea.vmem %s215_s6, 256  ;;  %p332_p2 = scmp.lt.s32.totalorder %s215_s6, %s215_s6 }
  0x29   :  { %241 = vmatprep.subr.bf16.mxu0 %v358_v0  ;;  %p328_p1 = scmp.ne.s32.totalorder %s215_s6, %s327_s3  ;;  %p333_p3 = scmp.lt.s32.totalorder %s327_s3, %s327_s3 }
  0x2b   :  { %p334_p4 = por %p333_p3, %p332_p2 }
  0x2c   :  { %242 = vmatpush3.bf16.msra.mxu0 %v264_v2 }
  0x2d   :  { %p335_p5 = pnand %p334_p4, %p328_p1 }
  0x2f   :  { %244 = vmatmul.mubr.msk.bf16.vlgmr.msra.gmra.mxu0 %vm96_vm1, %v265_v3 }
  0xef   :  { %v134_v4 = vpop.f32.mrf.mxu0 }
  0xf0   :  { %v135_v8 = vadd.f32 %v227_v5, %v134_v4 }
  0xf1   :  { %v245_v6 = vpop.f32.mrf.mxu0 }
  0xf3   :  { %v137_v7 = vpop.f32.mrf.mxu0 }
  0xf4   :  { %v138_v9 = vadd.f32 %v227_v5, %v137_v7 }
  0xf5   :  { %v246_v10 = vpop.f32.mrf.mxu0 }
  0xf6   :  { %v145_v11 = vpack.c.bf16 %v138_v9, %v135_v8 }
  0xf8   :  { %248 = vmatpush3.bf16.msra.mxu1 %v145_v11 }
  0xfb   :  { %250 = vmatmul.mubr.msk.bf16.vlgmr.msra.gmra.mxu1 %vm151_vm2, %v266_v12 }
 0x1bb   :  { %v189_v13 = vpop.f32.mrf.mxu1 }
 0x1bc   :  { %v205_v15 = vmax.f32 %v189_v13, 0.0 }
 0x1bd   :  { %v251_v14 = vpop.f32.mrf.mxu1 }
 0x1be   :  { %207 = vst [vmem:[#allocation8] sm:$0xff] %v205_v15 }
 0x1bf   :  { %v192_v16 = vpop.f32.mrf.mxu1 }
 0x1c0   :  { %v206_v18 = vmax.f32 %v192_v16, 0.0 }
 0x1c1   :  { %v252_v17 = vpop.f32.mrf.mxu1 }
 0x1c2   :  { %208 = vst [vmem:[#allocation8 + $0x8] sm:$0xff] %v206_v18 }
 0x1c3   :  { %338 = shalt.err (!%p335_p5)
}
 0x1c4   :  { %s361_s7 = smov 128   ;;  %s362_s8 = smov 8  }
 0x1c5   :  { %220 = dma.vmem_to_hbm [thread:$0]  %s215_s6, 256, %s407_s4, [#allocation4], %s361_s7, %s361_s7, %s362_s8  }
 0x1c6   :  { %351 = dma.done.wait [#allocation4], 256  }
 0x1c7   :  { %352 = vsyncadd [#allocation4], 4294967040 }
 0x1c8   :  { %224 = vsyncpa [#allocation3], 1 }
 0x1c9   :  { %225 = vsyncpa [#allocation6], 1 }
 0x1ca   :  { %226 = vsyncpa [#allocation4], 1 }

</bundles_post_ra>
